<compile_context>
chip_gen: v7x
topology: tpu7x:2x2x1
jax: 0.10.0
libtpu: 0.0.40
codegen_flags: <defaults>
</compile_context>

<pallas_src>
import functools

import jax
import jax.numpy as jnp
from jax import lax
from jax.experimental import pallas as pl
from jax.experimental.pallas import tpu as pltpu

_EPS = 1e-12          # torch.nn.functional.normalize default eps
_LANE = 128
_SUBLANE = 8
_MIN_GRID_STEPS = 8   # >= ~4 steps per TensorCore on v7x megacore


def _normalize_kernel(x_ref, o_ref, *, scale):
    # Block is (1, C, r_tile, 128) (4-D path) or (1, C, lanes) (3-D path);
    # in both cases the channel axis to reduce over is axis 1.
    x = x_ref[...].astype(jnp.float32)
    sq = jnp.sum(x * x, axis=1, keepdims=True)
    # torch F.normalize: x / max(||x||, eps)  ==  x * min(rsqrt(sumsq), 1/eps)
    inv = jnp.minimum(lax.rsqrt(sq), jnp.float32(1.0 / _EPS))
    o_ref[...] = (x * (jnp.float32(scale) * inv)).astype(o_ref.dtype)


def _vmem_limits():
    """Generation-aware (vmem_limit_bytes, per-tile budget) in bytes."""
    cap = 64 * 1024 * 1024  # conservative default (v7x per-core VMEM)
    try:
        cap = int(pltpu.get_tpu_info().vmem_capacity_bytes)
    except Exception:
        pass
    limit = min(cap - 16 * 1024 * 1024, 112 * 1024 * 1024)  # leave headroom
    limit = max(limit, 32 * 1024 * 1024)
    return limit, int(limit * 0.8)


def _choose_row_tiling(n_rows, batch, max_rows, sublane_multiple):
    """Split `n_rows` 128-lane rows into balanced tiles.

    Returns (rows_per_tile, num_tiles). When num_tiles > 1 and
    `sublane_multiple`, rows_per_tile is a multiple of 8; rows_per_tile never
    exceeds `max_rows` in the multi-tile case.
    """
    gran = _SUBLANE if sublane_multiple else 1
    max_rows_eff = max((max_rows // gran) * gran, gran)
    n_tiles = pl.cdiv(n_rows, max_rows_eff)                      # VMEM budget
    n_tiles = max(n_tiles, pl.cdiv(_MIN_GRID_STEPS, max(batch, 1)))  # pipeline
    n_tiles = min(n_tiles, pl.cdiv(n_rows, gran))                # >= 1 granule
    n_tiles = max(n_tiles, 1)
    if n_tiles == 1:
        return n_rows, 1
    r_tile = pl.cdiv(pl.cdiv(n_rows, n_tiles), gran) * gran      # balanced
    return r_tile, pl.cdiv(n_rows, r_tile)


def vq_cluster_euclid_forward(x, normalized_length, threshold=None):
    """Forward of VQClusterEuclid (threshold is unused in forward()).

    x: (N, C, H, W) array. Returns array of same shape/dtype.
    Note: normalized_length must be a static Python number (it is a module
    hyperparameter in the PyTorch spec); forward is the identity when <= 0.
    """
    del threshold  # not used by forward()
    if normalized_length <= 0:
        return x

    N, C, H, W = x.shape
    HW = H * W
    itemsize = x.dtype.itemsize

    vmem_limit, tile_budget = _vmem_limits()

    # Bytes of VMEM per 128-lane "row" of a (C x spatial) tile:
    # 2x double-buffered input + 2x double-buffered output (input dtype)
    # plus ~2 live f32 temporaries inside the kernel body.
    bytes_per_row = C * _LANE * (4 * itemsize + 2 * 4)
    max_rows = tile_budget // bytes_per_row
    if max_rows < 1:
        # TODO(synk): for extremely wide C, split the channel axis over a third
        # 'arbitrary' grid axis with a sum-of-squares accumulator in scratch.
        raise ValueError(
            f"C={C} ({x.dtype}) is too large for a single (C, 128) tile within "
            f"the {tile_budget}-byte VMEM tile budget.")

    R = pl.cdiv(HW, _LANE)  # number of 128-lane spatial rows

    # Prefer the (N, C, R, 128) layout (channel reduce on the VPU); it needs
    # HW % 128 == 0 and the minimum legal row tile to fit the budget.
    use_4d = (HW % _LANE == 0) and (max_rows >= min(R, _SUBLANE))

    kernel = functools.partial(_normalize_kernel, scale=float(normalized_length))

    cost = pl.CostEstimate(
        flops=3 * N * C * HW,
        transcendentals=N * HW,
        bytes_accessed=2 * N * C * HW * itemsize,
    )

    if use_4d:
        r_tile, n_tiles = _choose_row_tiling(R, N, max_rows, True)
        x_in = x.reshape(N, C, R, _LANE)  # contiguous reshape: free
        block = (1, C, r_tile, _LANE)
        index_map = lambda n, r: (n, 0, r, 0)
    else:
        r_tile, n_tiles = _choose_row_tiling(R, N, max_rows, False)
        x_in = x.reshape(N, C, HW)
        # Last block dim must be a multiple of 128 or the full extent.
        tile_hw = HW if n_tiles == 1 else r_tile * _LANE
        block = (1, C, tile_hw)
        index_map = lambda n, r: (n, 0, r)

    out = pl.pallas_call(
        kernel,
        out_shape=jax.ShapeDtypeStruct(x_in.shape, x.dtype),
        grid_spec=pltpu.PrefetchScalarGridSpec(
            num_scalar_prefetch=0,
            grid=(N, n_tiles),
            in_specs=[pl.BlockSpec(block, index_map)],
            out_specs=pl.BlockSpec(block, index_map),
        ),
        compiler_params=pltpu.CompilerParams(
            dimension_semantics=("parallel", "parallel"),
            vmem_limit_bytes=vmem_limit,
        ),
        input_output_aliases={0: 0},
        cost_estimate=cost,
    )(x_in)

    return out.reshape(N, C, H, W)


# TODO(synk): get_assignment() is a data-dependent while-loop greedy clustering
# with variable-length index sets per iteration; it is not part of forward()
# and has no clean static-shape Pallas formulation, so it is not implemented.


if __name__ == "__main__":
    key = jax.random.PRNGKey(0)
    normalized_length = 1.0
    threshold = 0.5  # ignored by forward(), kept for interface parity

    def reference(x):
        norm = jnp.sqrt(jnp.sum(x.astype(jnp.float32) ** 2, axis=1, keepdims=True))
        return (normalized_length * x / jnp.maximum(norm, _EPS)).astype(x.dtype)

    k1, k2 = jax.random.split(key)

    # Case 1: H*W multiple of 128 -> (N, C, R, 128) layout (VPU channel reduce).
    x1 = jax.random.normal(k1, (2, 4, 16, 16), dtype=jnp.float32)
    y1 = jax.block_until_ready(
        vq_cluster_euclid_forward(x1, normalized_length, threshold))
    assert y1.shape == x1.shape and y1.dtype == x1.dtype
    assert jnp.allclose(y1, reference(x1), atol=1e-5, rtol=1e-5)

    # Case 2: H*W NOT a multiple of 128 -> flat (N, C, HW) layout; the spatial
    # tail is handled by the uneven grid inside the kernel (no pad / slice).
    x2 = jax.random.normal(k2, (2, 4, 15, 15), dtype=jnp.float32)
    y2 = jax.block_until_ready(
        vq_cluster_euclid_forward(x2, normalized_length, threshold))
    assert y2.shape == x2.shape and y2.dtype == x2.dtype
    assert jnp.allclose(y2, reference(x2), atol=1e-5, rtol=1e-5)

    # normalized_length <= 0 -> identity (module returns x unchanged).
    y3 = vq_cluster_euclid_forward(x1, 0.0, threshold)
    assert bool((y3 == x1).all())

    print("KERNEL_OK")
</pallas_src>

<mosaic_0001>
module attributes {stable_mosaic.version = 11 : i64} {
  func.func @_normalize_kernel(%arg0: i32, %arg1: i32, %arg2: memref<1x4x2x128xf32, #tpu.memory_space<vmem>>, %arg3: memref<1x4x2x128xf32, #tpu.memory_space<vmem>>) attributes {dimension_semantics = [#tpu.dimension_semantics<parallel>, #tpu.dimension_semantics<parallel>], iteration_bounds = array<i64: 2, 1>, scalar_prefetch = 0 : i64, scratch_operands = 0 : i64, tpu.core_type = #tpu.core_type<tc>, window_params = [{transform_indices = @transform_0, window_bounds = array<i64: 1, 4, 2, 128>}, {transform_indices = @transform_1, window_bounds = array<i64: 1, 4, 2, 128>}]} {
    %c0 = arith.constant 0 : index
    %c0_0 = arith.constant 0 : index
    %c0_1 = arith.constant 0 : index
    %c0_2 = arith.constant 0 : index
    %0 = vector.load %arg2[%c0, %c0_0, %c0_1, %c0_2] : memref<1x4x2x128xf32, #tpu.memory_space<vmem>>, vector<1x4x2x128xf32>
    %1 = arith.mulf %0, %0 : vector<1x4x2x128xf32>
    %cst = arith.constant dense<0.000000e+00> : vector<1x2x128xf32>
    %2 = vector.multi_reduction <add>, %1, %cst [1] : vector<1x4x2x128xf32> to vector<1x2x128xf32>
    %3 = vector.shape_cast %2 : vector<1x2x128xf32> to vector<1x1x2x128xf32>
    %4 = math.rsqrt %3 : vector<1x1x2x128xf32>
    %cst_3 = arith.constant 9.99999995E+11 : f32
    %5 = vector.broadcast %cst_3 : f32 to vector<1x1x2x128xf32>
    %6 = arith.minimumf %4, %5 : vector<1x1x2x128xf32>
    %cst_4 = arith.constant 1.000000e+00 : f32
    %7 = vector.broadcast %cst_4 : f32 to vector<1x1x2x128xf32>
    %8 = arith.mulf %7, %6 : vector<1x1x2x128xf32>
    %9 = vector.broadcast %8 : vector<1x1x2x128xf32> to vector<1x4x2x128xf32>
    %10 = arith.mulf %0, %9 : vector<1x4x2x128xf32>
    %c0_5 = arith.constant 0 : index
    %c0_6 = arith.constant 0 : index
    %c0_7 = arith.constant 0 : index
    %c0_8 = arith.constant 0 : index
    %11 = vector.load %arg3[%c0_5, %c0_6, %c0_7, %c0_8] : memref<1x4x2x128xf32, #tpu.memory_space<vmem>>, vector<1x4x2x128xf32>
    tpu.vector_store %arg3[%c0_5, %c0_6, %c0_7, %c0_8], %10 {strides = array<i32>} : memref<1x4x2x128xf32, #tpu.memory_space<vmem>>, vector<1x4x2x128xf32>,
    return
  }
  func.func @transform_0(%arg0: i32, %arg1: i32) -> (i32, i32, i32, i32) {
    %c0_i32 = arith.constant 0 : i32
    %c0_i32_0 = arith.constant 0 : i32
    %c0_i32_1 = arith.constant 0 : i32
    return %arg0, %c0_i32, %arg1, %c0_i32_0 : i32, i32, i32, i32
  }
  func.func @transform_1(%arg0: i32, %arg1: i32) -> (i32, i32, i32, i32) {
    %c0_i32 = arith.constant 0 : i32
    %c0_i32_0 = arith.constant 0 : i32
    %c0_i32_1 = arith.constant 0 : i32
    return %arg0, %c0_i32, %arg1, %c0_i32_0 : i32, i32, i32, i32
  }
}

</mosaic_0001>

<bundles_post_ra>
// kernel: tpu_custom_call.1
= control target key start
LH: loop header
LB: loop body
LE: loop exit
PB: predicated region body
PF: predicated region fallthrough
CT: control target
= control target key end

     0   :  { %6 = vsyncpa [#allocation3], 0  ;;  %s668_s0 = inlined_call_operand.hbm [shape: f32[2,4,2,128], index: 0, kind: input, shape index: {}, may-alias: {0,1}]   ;;  %s669_s1 = inlined_call_operand.hbm [shape: f32[2,4,2,128], index: 1, kind: output, shape index: {}, may-alias: {0,1}]  }
   0x1   :  { %8 = vsyncpa [#allocation3 + $0x1], 0 }
   0x2   :  { %9 = vsyncpa [#allocation4], 0 }
   0x3   :  { %11 = vsyncpa [#allocation4 + $0x1], 0  ;;  %s493_s6 = smov 0   ;;  %s495_s7 = smov 0  }
   0x4   :  { %s497_s8 = smov 0   ;;  %s499_s9 = smov 0  }
   0x5   :  { %s501_s10 = smov 0   ;;  %s503_s11 = smov 0  }
   0x6 LB: > { %s278_s12 = sadd.s32 4294967295, %s475_s11   ;;  %s279_s13 = sadd.s32 4294967294, %s475_s11   ;;  %s475_s11 = sphi %s503_s11, %s17_s11   ;;  %s471_s10 = sphi %s501_s10, %s684_s10   ;;  %s467_s9 = sphi %s499_s9, %s683_s9   ;;  %s463_s8 = sphi %s497_s8, %s682_s8   ;;  %s459_s7 = sphi %s495_s7, %s681_s7   ;;  %s455_s6 = sphi %s493_s6, %s680_s6  }
   0x7   : > { %s29_s14 = sadd.s32 1, %s471_s10  ;;  %s38_s15 = sadd.s32 1, %s463_s8 }
   0x8   : > { %p31_p0 = scmp.ge.s32.totalorder %s29_s14, 2  ;;  %p45_p1 = scmp.ne.s32.totalorder %s463_s8, %s459_s7 }
   0x9   : > { %p46_p2 = scmp.eq.s32.totalorder %s475_s11, 0  ;;  %p51_p3 = scmp.ne.s32.totalorder %s459_s7, %s455_s6 }
   0xa   : > { %s686_s14 = smov (%p31_p0, %s29_s14), 0  ;;  %p52_p5 = scmp.eq.s32.totalorder %s278_s12, 0 }
   0xb   : > { %p534_p4 = por %p46_p2, %p45_p1  ;;  %s33_s17 = ssub.s32 %s471_s10, %s686_s14 }
   0xc   : > { %p77_p6 = scmp.eq.s32.totalorder %s278_s12, 1  ;;  %p36_p7 = scmp.eq.s32.totalorder %s33_s17, 0 }
   0xd   : > { %p540_p8 = por %p52_p5, %p51_p3  ;;  %p83_p10 = scmp.eq.s32.totalorder %s279_s13, 1 }
   0xe   : > { %p544_p9 = por %p77_p6, %p45_p1  ;;  %p307_p13 = scmp.lt.s32.totalorder %s475_s11, 2 }
   0xf   : > { %s549_s20 = scalar_select %p36_p7, %s463_s8, %s38_s15  }
  0x10   : > { %s673_s19 = scalar_select %p544_p9, 1, 0 }
  0x11   : > { %p551_p11 = por %p83_p10, %p51_p3  ;;  %s103_s22 = sand.u32 1, %s463_s8  }
  0x12   : > { %s282_s23 = sshll.u32 %s103_s22, 3  ;;  %s293_s24 = sshll.u32 %s471_s10, 7 }
  0x13   : > { %s674_s21 = scalar_select %p551_p11, 1, 0 }
  0x14   : > { %s562_s27 = scalar_lea.hbm %s668_s0, %s293_s24  ;;  %s107_s28 = scalar_lea.vmem [#allocation2], %s282_s23 }
  0x15   : > { %s115_s29 = sshll.u32 %s107_s28, 4  ;;  %p568_p0 = pnand %p307_p13, %p534_p4  ;;  %s564_s29 = int_to_ptr.vmem [resolvable:$true] %s115_s29 }
  0x16   : > { %s573_s2 = scalar_lea.sflag [#allocation3], %s103_s22  ;;  %s363_s3 = scalar_lea.hbm %s562_s27, 128 }
  0x17   : > { %p364_p2 = scmp.ne.s32.totalorder %s562_s27, %s363_s3  ;;  %p365_p3 = pneg %p568_p0 }
  0x18   : > { %s368_s12 = scalar_lea.hbm %s668_s0, 256  ;;  %p369_p4 = scmp.lt.u32.totalorder %s562_s27, %s668_s0 }
  0x19   : > { %p366_p5 = pnand %p365_p3, %p364_p2  ;;  %p370_p7 = scmp.lt.u32.totalorder %s368_s12, %s363_s3 }
  0x1a   : > { %p372_p13 = scmp.lt.u32.totalorder %s363_s3, %s562_s27 }
  0x1b   : > { %p367_p6 = pneg %p366_p5  ;;  %p371_p10 = por %p370_p7, %p369_p4 }
  0x1d   : > { %p373_p12 = por %p372_p13, %p371_p10 }
  0x1f   : > { %p374_p1 = pnand %p373_p12, %p367_p6 }
  0x21   : > { %377 = shalt.err (!%p374_p1)
}
  0x22   : > { %s378_s16 = scalar_lea.vmem %s564_s29, 128  ;;  %s477_s17 = smov [#allocation2]  }
  0x23   : > { %p379_p2 = scmp.ne.s32.totalorder %s564_s29, %s378_s16  ;;  %s383_s22 = sshll.u32 %s477_s17, 4  ;;  %s384_s22 = int_to_ptr.vmem [resolvable:$false] %s383_s22 }
  0x24   : > { %s385_s23 = scalar_lea.vmem %s384_s22, 256  ;;  %p386_p9 = scmp.lt.s32.totalorder %s564_s29, %s384_s22 }
  0x25   : > { %p381_p5 = pnand %p379_p2, %p365_p3  ;;  %p387_p4 = scmp.lt.s32.totalorder %s385_s23, %s378_s16 }
  0x27   : > { %p382_p11 = pneg %p381_p5  ;;  %p388_p7 = por %p387_p4, %p386_p9 }
  0x29   : > { %p389_p10 = pnand %p388_p7, %p382_p11 }
  0x2b   : > { %392 = shalt.err (!%p389_p10)
}
  0x2c   : > { %s478_s24 = smov 32   ;;  %s479_s25 = smov 2  }
  0x2d   : > { %302 = dma.hbm_to_vmem [thread:$0]  (!%p568_p0), %s562_s27, 128, %s564_s29, %s573_s2, %s478_s24, %s478_s24, %s479_s25  }
  0x2e   : > { %p123_p12 = scmp.lt.s32.totalorder %s475_s11, 3  ;;  %p676_p1 = scmp.ge.s32.totalorder %s475_s11, 1 }
  0x30   : > { %p124_p3 = pnand %p676_p1, %p123_p12 }
  0x31   : > { %s605_s26 = sand.u32 (!%p124_p3), 1, %s459_s7  }
  0x32   : > { %127 = sbr.rel (%p124_p3) target bundleno = 99 (0x63), region = 24  ;;  %s286_s28 = sshll.u32 (!%p124_p3), %s605_s26, 3 }
  0x33   : > { %s130_s3 = scalar_lea.sflag (!%p124_p3), [#allocation3], %s605_s26  ;;  %s133_s4 = scalar_lea.vmem (!%p124_p3), [#allocation2], %s286_s28 }
  0x39   : > { %446 = dma.done.wait (%p540_p8), %s130_s3, 128  }
  0x3a   : > { %448 = vsyncadd (%p540_p8), %s130_s3, 4294967168  ;;  %vm160_vm0 = vcmask 1041408   ;;  %v152_v0 = vld [vmem:[%s133_s4] sm:$0x3]  ;;  %v153_v1 = vld [vmem:[%s133_s4 + $0x2] sm:$0x3] }
  0x3b   : > { %v154_v2 = vld [vmem:[%s133_s4 + $0x4] sm:$0x3]  ;;  %v155_v3 = vld [vmem:[%s133_s4 + $0x6] sm:$0x3]  ;;  %v156_v4 = vmul.f32 %v152_v0, %v152_v0  ;;  %v157_v5 = vmul.f32 %v153_v1, %v153_v1  ;;  %s151_s18 = scalar_lea.vmem [#allocation5], %s286_s28  ;;  %s294_s29 = sshll.u32 %s467_s9, 7 }
  0x3c   : > { %v158_v6 = vmul.f32 %v154_v2, %v154_v2  ;;  %v159_v7 = vmul.f32 %v155_v3, %v155_v3  ;;  %s193_s27 = sshll.u32 %s151_s18, 4  ;;  %s619_s5 = scalar_lea.hbm %s669_s1, %s294_s29  ;;  %s614_s27 = int_to_ptr.vmem [resolvable:$true] %s193_s27 }
  0x3d   : > { %v161_v8 = vsel %vm160_vm0, %v156_v4, 0.0  ;;  %v162_v9 = vsel %vm160_vm0, %v157_v5, 0.0  ;;  %s179_s9 = scalar_lea.sflag [#allocation4], %s605_s26  ;;  %s393_s12 = scalar_lea.vmem %s614_s27, 128 }
  0x3e   : > { %v164_v10 = vsel %vm160_vm0, %v158_v6, 0.0  ;;  %v163_v11 = vadd.f32 %v162_v9, %v161_v8  ;;  %v166_v12 = vsel %vm160_vm0, %v159_v7, 0.0  ;;  %p394_p8 = scmp.ne.s32.totalorder %s614_s27, %s393_s12  ;;  %p677_p9 = scmp.ne.s32.totalorder %s673_s19, 0 }
  0x3f   : > { %s480_s13 = smov [#allocation5]  }
  0x40   : > { %v165_v13 = vadd.f32 %v164_v10, %v163_v11  ;;  %p395_p11 = pnand %p394_p8, %p677_p9  ;;  %s397_s15 = sshll.u32 %s480_s13, 4  ;;  %s398_s15 = int_to_ptr.vmem [resolvable:$false] %s397_s15 }
  0x41   : > { %s399_s16 = scalar_lea.vmem %s398_s15, 256  ;;  %p400_p6 = scmp.lt.s32.totalorder %s614_s27, %s398_s15 }
  0x42   : > { %v167_v14 = vadd.f32 %v166_v12, %v165_v13  ;;  %p396_p0 = pneg %p395_p11  ;;  %p401_p13 = scmp.lt.s32.totalorder %s399_s16, %s393_s12 }
  0x44   : > { %361 = vrsqrt.f32 %v167_v14  ;;  %p402_p2 = por %p401_p13, %p400_p6 }
  0x46   : > { %p403_p5 = pnand %p402_p2, %p396_p0 }
  0x4e   : > { %v362_v15 = vpop.eup %361 }
  0x4f   : > { %v169_v16 = vmin.f32 %v362_v15, 1e+12 }
  0x51   : > { %v170_v17 = vmul.f32 %v169_v16, %v152_v0  ;;  %v171_v18 = vmul.f32 %v169_v16, %v153_v1  ;;  %v172_v19 = vmul.f32 %v169_v16, %v154_v2  ;;  %v173_v20 = vmul.f32 %v169_v16, %v155_v3 }
  0x53   : > { %174 = vst [vmem:[%s151_s18] sm:$0x3] %v170_v17  ;;  %175 = vst [vmem:[%s151_s18 + $0x2] sm:$0x3] %v171_v18 }
  0x54   : > { %176 = vst [vmem:[%s151_s18 + $0x4] sm:$0x3] %v172_v19  ;;  %177 = vst [vmem:[%s151_s18 + $0x6] sm:$0x3] %v173_v20 }
  0x55   : > { %406 = shalt.err (!%p403_p5)
}
  0x56   : > { %s407_s17 = scalar_lea.hbm %s619_s5, 128  ;;  %s411_s24 = scalar_lea.hbm %s669_s1, 256 }
  0x57   : > { %p408_p4 = scmp.ne.s32.totalorder %s619_s5, %s407_s17  ;;  %p412_p12 = scmp.lt.u32.totalorder %s619_s5, %s669_s1 }
  0x58   : > { %p413_p1 = scmp.lt.u32.totalorder %s411_s24, %s407_s17  ;;  %p415_p8 = scmp.lt.u32.totalorder %s407_s17, %s619_s5 }
  0x59   : > { %p409_p7 = pnand %p408_p4, %p677_p9 }
  0x5a   : > { %p414_p3 = por %p413_p1, %p412_p12 }
  0x5b   : > { %p410_p10 = pneg %p409_p7 }
  0x5c   : > { %p416_p11 = por %p415_p8, %p414_p3 }
  0x5e   : > { %p417_p0 = pnand %p416_p11, %p410_p10 }
  0x60   : > { %420 = shalt.err (!%p417_p0)
}
  0x61   : > { %s481_s3 = smov 32   ;;  %s482_s4 = smov 2  }
  0x62   : > { %297 = dma.vmem_to_hbm [thread:$0]  (%p677_p9), %s614_s27, 128, %s619_s5, %s179_s9, %s481_s3, %s481_s3, %s482_s4  }
  0x63 PF: > { %s208_s18 = sand.u32 1, %s455_s6   ;;  %p678_p6 = scmp.ne.s32.totalorder %s674_s21, 0 }
  0x64   : > { %p679_p13 = scmp.ge.s32.totalorder %s475_s11, 2  ;;  %s209_s29 = scalar_lea.sflag [#allocation4], %s208_s18 }
  0x66   : > { %p304_p2 = pnand %p679_p13, %p678_p6 }
  0x68   : > { %450 = dma.done.wait (!%p304_p2), %s209_s29, 128  }
  0x69   : > { %452 = vsyncadd (!%p304_p2), %s209_s29, 4294967168  ;;  %s17_s11 = sadd.s32 1, %s475_s11   ;;  %s680_s6 = smov %s459_s7 }
  0x6a   : > { %p14_p5 = scmp.ge.s32.totalorder %s17_s11, 4   ;;  %s681_s7 = smov %s463_s8 }
  0x6b   : > { %s682_s8 = smov %s549_s20  ;;  %s683_s9 = smov %s471_s10 }
  0x6c   : > { %s684_s10 = smov %s686_s14  ;;  %16 = sbr.rel (!%p14_p5) target bundleno = 6 (0x6), region = 69 }
  0x73   :  { %214 = vsyncpa [#allocation3], 1 }
  0x74   :  { %216 = vsyncpa [#allocation3 + $0x1], 1 }
  0x75   :  { %217 = vsyncpa [#allocation4], 1 }
  0x76   :  { %219 = vsyncpa [#allocation4 + $0x1], 1 }

</bundles_post_ra>
